<compile_context>
chip_gen: v7x
topology: tpu7x:2x2x1
jax: 0.10.0
libtpu: 0.0.40
codegen_flags: <defaults>
</compile_context>

<pallas_src>
import functools

import jax
import jax.numpy as jnp
from jax import lax
from jax.experimental import pallas as pl
from jax.experimental.pallas import tpu as pltpu

EPS = 1e-8       # GlobalLayerNorm eps
LN_EPS = 1e-5    # nn.LayerNorm default eps


def temporal_block_kernel(x_ref, w1_ref, ln_w_ref, ln_b_ref, wdw_ref,
                          wpw_ref, pwb_ref, a1_ref, a2_ref, o_ref,
                          *, ksize, dilation, mxu_dtype):
    cp = (ksize - 1) * dilation          # causal padding
    T = x_ref.shape[1]
    cout = w1_ref.shape[0]

    x = x_ref[...]                                                    # [Cin, T] f32

    # ---- 1x1 conv: MXU contraction over channels (bf16 operands optional) ----
    y = jnp.dot(w1_ref[...].astype(mxu_dtype), x.astype(mxu_dtype),
                preferred_element_type=jnp.float32)                   # [Cout, T]

    # ---- PReLU #1 (single shared slope) ----
    a1 = a1_ref[0, 0]
    y = jnp.where(y > 0, y, a1 * y)

    # ---- LayerNorm over the channel dim (per time column) ----
    mu = jnp.mean(y, axis=0, keepdims=True)                           # [1, T]
    yc = y - mu
    var = jnp.mean(yc * yc, axis=0, keepdims=True)                    # [1, T]
    y = yc * lax.rsqrt(var + LN_EPS) * ln_w_ref[...] + ln_b_ref[...]  # [Cout,1] bcast

    # ---- causal depthwise dilated conv via lane rotations (XLU) ----
    # dw[:, t]  = causal (left zero-padded) depthwise output t, t in [0, T)
    # circ      = circular conv; tail = circ - dw is exactly the overhang
    #             outputs at positions T..T+cp-1 (nonzero only in columns
    #             [0, cp)); it feeds only the gLN statistics.
    need_tail = cp > 0
    t_idx = lax.broadcasted_iota(jnp.int32, (1, T), 1)
    wdw = wdw_ref[...]                                                # [Cout, K]
    dw = None
    circ = None
    for k in range(ksize):
        s_k = (ksize - 1 - k) * dilation                 # backward shift of tap k
        rolled = y if s_k == 0 else pltpu.roll(y, s_k, axis=1)
        tap = wdw[:, k:k + 1] * rolled                                # [Cout, T]
        if need_tail:
            circ = tap if circ is None else circ + tap
        m = tap if s_k == 0 else jnp.where(t_idx >= s_k, tap, 0.0)
        dw = m if dw is None else dw + m

    # ---- PReLU #2 + Global layer norm (over channels AND length T + cp) ----
    a2 = a2_ref[0, 0]
    if need_tail:
        tail = circ - dw                     # pre-activation overhang (zeros for t>=cp)
        tail = jnp.where(tail > 0, tail, a2 * tail)
        s_tail = jnp.sum(tail, keepdims=True)                         # [1, 1]
        ss_tail = jnp.sum(tail * tail, keepdims=True)                 # [1, 1]
    dw = jnp.where(dw > 0, dw, a2 * dw)

    inv_n = 1.0 / (cout * (T + cp))
    s_main = jnp.sum(dw, keepdims=True)                               # [1, 1]
    mean = (s_main + s_tail) * inv_n if need_tail else s_main * inv_n
    cm = dw - mean                                                    # reused for output
    ss_dev = jnp.sum(cm * cm, keepdims=True)
    if need_tail:
        # sum over the cp real overhang positions of (tail - mean)^2, using the
        # already-reduced scalars (tail is exactly zero outside those columns).
        ss_dev = ss_dev + ss_tail - 2.0 * mean * s_tail + (cout * cp) * mean * mean
    g = cm * lax.rsqrt(ss_dev * inv_n + EPS)      # gLN affine folded into wpw / pwb

    # ---- pointwise 1x1 conv back to Cin + residual ----
    pw = jnp.dot(wpw_ref[...].astype(mxu_dtype), g.astype(mxu_dtype),
                 preferred_element_type=jnp.float32)                  # [Cin, T]
    o_ref[...] = pw + pwb_ref[...] + x


def temporal_block(x, params, *, ksize, dilation, mxu_dtype=jnp.float32):
    B, Cin, T = x.shape
    Cout = params["w1"].shape[0]
    cp = (ksize - 1) * dilation
    assert cp < T, "causal padding must be smaller than the sequence length"

    # Fold the gLN affine (gamma, beta) into the pointwise conv (exact).
    wpw = params["w_pw"] * params["gln_g"][:, 0][None, :]             # [Cin, Cout]
    pwb = params["w_pw"] @ params["gln_b"]                            # [Cin, 1]

    kernel = functools.partial(temporal_block_kernel, ksize=ksize,
                               dilation=dilation, mxu_dtype=mxu_dtype)

    grid_spec = pltpu.PrefetchScalarGridSpec(
        num_scalar_prefetch=0,
        grid=(B,),                                       # one batch element per step
        in_specs=[
            pl.BlockSpec((None, Cin, T), lambda b: (b, 0, 0)),        # x (native layout)
            pl.BlockSpec((Cout, Cin), lambda b: (0, 0)),              # conv1x1 weight
            pl.BlockSpec((Cout, 1), lambda b: (0, 0)),                # LayerNorm weight
            pl.BlockSpec((Cout, 1), lambda b: (0, 0)),                # LayerNorm bias
            pl.BlockSpec((Cout, ksize), lambda b: (0, 0)),            # depthwise weight
            pl.BlockSpec((Cin, Cout), lambda b: (0, 0)),              # pointwise (gLN folded)
            pl.BlockSpec((Cin, 1), lambda b: (0, 0)),                 # pointwise bias (folded)
            pl.BlockSpec((1, 1), lambda b: (0, 0),
                         memory_space=pltpu.MemorySpace.SMEM),        # PReLU a1
            pl.BlockSpec((1, 1), lambda b: (0, 0),
                         memory_space=pltpu.MemorySpace.SMEM),        # PReLU a2
        ],
        out_specs=pl.BlockSpec((None, Cin, T), lambda b: (b, 0, 0)),
    )

    # Explicit VMEM budget: double-buffered in/out blocks + ~6 live [Cout, T]
    # f32 intermediates + weights (capped at 64 MiB so it is valid on v7x).
    weight_bytes = 4 * (2 * Cout * Cin + Cout * ksize + 2 * Cout + Cin)
    tile_bytes = 4 * (2 * Cin * T + 6 * Cout * T)
    vmem_limit = int(min(64 * 1024 * 1024,
                         max(2 * (2 * tile_bytes + weight_bytes), 4 * 1024 * 1024)))

    cost = pl.CostEstimate(
        flops=int(B * T * (4 * Cin * Cout + 2 * Cout * ksize + 12 * Cout)),
        transcendentals=int(B * T + B),
        bytes_accessed=int(8 * B * Cin * T + 2 * weight_bytes))

    return pl.pallas_call(
        kernel,
        out_shape=jax.ShapeDtypeStruct((B, Cin, T), jnp.float32),
        grid_spec=grid_spec,
        compiler_params=pltpu.CompilerParams(
            dimension_semantics=("parallel",),
            vmem_limit_bytes=vmem_limit),
        cost_estimate=cost,
    )(x, params["w1"], params["ln_w"], params["ln_b"], params["w_dw"],
      wpw, pwb, params["a1"], params["a2"])


def reference(x, params, *, ksize, dilation):
    """Pure-JAX reference mirroring the PyTorch forward."""
    w1, w_dw, w_pw = params["w1"], params["w_dw"], params["w_pw"]
    ln_w, ln_b = params["ln_w"][:, 0], params["ln_b"][:, 0]
    gln_g, gln_b = params["gln_g"][:, 0], params["gln_b"][:, 0]
    a1, a2 = params["a1"][0, 0], params["a2"][0, 0]
    B, Cin, T = x.shape
    Cout = w1.shape[0]
    cp = (ksize - 1) * dilation

    y = jnp.einsum("oc,bct->bot", w1, x)
    y = jnp.where(y > 0, y, a1 * y)
    mean = y.mean(axis=1, keepdims=True)
    var = ((y - mean) ** 2).mean(axis=1, keepdims=True)
    y = (y - mean) / jnp.sqrt(var + LN_EPS)
    y = y * ln_w[None, :, None] + ln_b[None, :, None]

    dw = lax.conv_general_dilated(
        y, w_dw[:, None, :], window_strides=(1,), padding=[(cp, cp)],
        rhs_dilation=(dilation,), dimension_numbers=("NCH", "OIH", "NCH"),
        feature_group_count=Cout)
    dw = jnp.where(dw > 0, dw, a2 * dw)
    gmean = dw.mean(axis=(1, 2), keepdims=True)
    gvar = ((dw - gmean) ** 2).mean(axis=(1, 2), keepdims=True)
    g = gln_g[None, :, None] * (dw - gmean) / jnp.sqrt(gvar + EPS) \
        + gln_b[None, :, None]
    pw = jnp.einsum("oc,bct->bot", w_pw, g)
    return pw[:, :, :T] + x


if __name__ == "__main__":
    B, Cin, Cout, T = 2, 16, 32, 128
    ksize, stride, dilation = 3, 1, 2   # stride must be 1 for the residual add

    key = jax.random.PRNGKey(0)
    k0, k1, k2, k3, k4, k5, k6, k7 = jax.random.split(key, 8)

    x = jax.random.normal(k0, (B, Cin, T), dtype=jnp.float32)

    params = {
        # conv1x1: PyTorch weight [Cout, Cin, 1] -> [Cout, Cin]
        "w1": jax.random.normal(k1, (Cout, Cin), jnp.float32) * 0.1,
        # PReLU slopes (nn.PReLU default init 0.25)
        "a1": jnp.full((1, 1), 0.25, jnp.float32),
        "a2": jnp.full((1, 1), 0.25, jnp.float32),
        # nn.LayerNorm(out_channels) affine (perturbed to exercise the path)
        "ln_w": 1.0 + 0.1 * jax.random.normal(k4, (Cout, 1), jnp.float32),
        "ln_b": 0.1 * jax.random.normal(k5, (Cout, 1), jnp.float32),
        # depthwise weight: PyTorch [Cout, 1, ksize] -> [Cout, ksize]
        "w_dw": jax.random.normal(k2, (Cout, ksize), jnp.float32) * 0.1,
        # GlobalLayerNorm gamma/beta (perturbed to exercise the affine fold)
        "gln_g": 1.0 + 0.1 * jax.random.normal(k6, (Cout, 1), jnp.float32),
        "gln_b": 0.1 * jax.random.normal(k7, (Cout, 1), jnp.float32),
        # pointwise: PyTorch [Cin, Cout, 1] -> [Cin, Cout]
        "w_pw": jax.random.normal(k3, (Cin, Cout), jnp.float32) * 0.1,
    }

    ref = jax.block_until_ready(reference(x, params, ksize=ksize, dilation=dilation))

    # f32 MXU path (default; tight tolerance)
    out = jax.block_until_ready(
        temporal_block(x, params, ksize=ksize, dilation=dilation))
    assert out.shape == (B, Cin, T)
    assert jnp.allclose(out, ref, atol=2e-4, rtol=2e-4), \
        f"f32 max abs err = {jnp.max(jnp.abs(out - ref))}"

    # bf16 MXU-operand path (recommended on v6e/v7x at production channel sizes)
    out_bf16 = jax.block_until_ready(
        temporal_block(x, params, ksize=ksize, dilation=dilation,
                       mxu_dtype=jnp.bfloat16))
    assert jnp.allclose(out_bf16, ref, atol=5e-2, rtol=5e-2), \
        f"bf16 max abs err = {jnp.max(jnp.abs(out_bf16 - ref))}"

    print("KERNEL_OK")
</pallas_src>

<mosaic_0001>
module attributes {stable_mosaic.version = 11 : i64} {
  func.func @temporal_block_kernel(%arg0: i32, %arg1: memref<1x16x128xf32, #tpu.memory_space<vmem>>, %arg2: memref<32x16xf32, #tpu.memory_space<vmem>>, %arg3: memref<32x1xf32, #tpu.memory_space<vmem>>, %arg4: memref<32x1xf32, #tpu.memory_space<vmem>>, %arg5: memref<32x3xf32, #tpu.memory_space<vmem>>, %arg6: memref<16x32xf32, #tpu.memory_space<vmem>>, %arg7: memref<16x1xf32, #tpu.memory_space<vmem>>, %arg8: memref<1x1xf32, #tpu.memory_space<smem>>, %arg9: memref<1x1xf32, #tpu.memory_space<smem>>, %arg10: memref<1x16x128xf32, #tpu.memory_space<vmem>>) attributes {dimension_semantics = [#tpu.dimension_semantics<parallel>], iteration_bounds = array<i64: 2>, scalar_prefetch = 0 : i64, scratch_operands = 0 : i64, tpu.core_type = #tpu.core_type<tc>, window_params = [{transform_indices = @transform_0, window_bounds = array<i64: 1, 16, 128>}, {pipeline_mode = #tpu.pipeline_mode<synchronous>, transform_indices = @transform_1, window_bounds = array<i64: 32, 16>}, {pipeline_mode = #tpu.pipeline_mode<synchronous>, transform_indices = @transform_2, window_bounds = array<i64: 32, 1>}, {pipeline_mode = #tpu.pipeline_mode<synchronous>, transform_indices = @transform_3, window_bounds = array<i64: 32, 1>}, {pipeline_mode = #tpu.pipeline_mode<synchronous>, transform_indices = @transform_4, window_bounds = array<i64: 32, 3>}, {pipeline_mode = #tpu.pipeline_mode<synchronous>, transform_indices = @transform_5, window_bounds = array<i64: 16, 32>}, {pipeline_mode = #tpu.pipeline_mode<synchronous>, transform_indices = @transform_6, window_bounds = array<i64: 16, 1>}, {transform_indices = @transform_7, window_bounds = array<i64: 1, 1>}, {transform_indices = @transform_8, window_bounds = array<i64: 1, 1>}, {transform_indices = @transform_9, window_bounds = array<i64: 1, 16, 128>}]} {
    %c0 = arith.constant 0 : index
    %c0_0 = arith.constant 0 : index
    %c0_1 = arith.constant 0 : index
    %0 = vector.load %arg1[%c0, %c0_0, %c0_1] : memref<1x16x128xf32, #tpu.memory_space<vmem>>, vector<1x16x128xf32>
    %1 = vector.shape_cast %0 : vector<1x16x128xf32> to vector<16x128xf32>
    %c0_2 = arith.constant 0 : index
    %c0_3 = arith.constant 0 : index
    %2 = vector.load %arg2[%c0_2, %c0_3] : memref<32x16xf32, #tpu.memory_space<vmem>>, vector<32x16xf32>
    %cst = arith.constant dense<0.000000e+00> : vector<32x128xf32>
    %3 = tpu.matmul %2, %1, %cst {dimension_numbers = #tpu.dot_dimension_numbers<[1], [0], [0], [1], [0, 0, 1, 1], [], []>} : vector<32x16xf32>, vector<16x128xf32>, vector<32x128xf32> -> vector<32x128xf32>
    %c0_4 = arith.constant 0 : index
    %c0_5 = arith.constant 0 : index
    %4 = memref.load %arg8[%c0_4, %c0_5] : memref<1x1xf32, #tpu.memory_space<smem>>
    %cst_6 = arith.constant 0.000000e+00 : f32
    %5 = vector.broadcast %cst_6 : f32 to vector<32x128xf32>
    %6 = arith.cmpf ogt, %3, %5 : vector<32x128xf32>
    %7 = vector.broadcast %4 : f32 to vector<32x128xf32>
    %8 = arith.mulf %7, %3 : vector<32x128xf32>
    %9 = arith.select %6, %3, %8 : vector<32x128xi1>, vector<32x128xf32>
    %cst_7 = arith.constant dense<0.000000e+00> : vector<128xf32>
    %10 = vector.multi_reduction <add>, %9, %cst_7 [0] : vector<32x128xf32> to vector<128xf32>
    %11 = vector.shape_cast %10 : vector<128xf32> to vector<1x128xf32>
    %cst_8 = arith.constant 3.200000e+01 : f32
    %12 = vector.broadcast %cst_8 : f32 to vector<1x128xf32>
    %13 = arith.divf %11, %12 : vector<1x128xf32>
    %14 = vector.broadcast %13 : vector<1x128xf32> to vector<32x128xf32>
    %15 = arith.subf %9, %14 : vector<32x128xf32>
    %16 = arith.mulf %15, %15 : vector<32x128xf32>
    %cst_9 = arith.constant dense<0.000000e+00> : vector<128xf32>
    %17 = vector.multi_reduction <add>, %16, %cst_9 [0] : vector<32x128xf32> to vector<128xf32>
    %18 = vector.shape_cast %17 : vector<128xf32> to vector<1x128xf32>
    %cst_10 = arith.constant 3.200000e+01 : f32
    %19 = vector.broadcast %cst_10 : f32 to vector<1x128xf32>
    %20 = arith.divf %18, %19 : vector<1x128xf32>
    %cst_11 = arith.constant 9.99999974E-6 : f32
    %21 = vector.broadcast %cst_11 : f32 to vector<1x128xf32>
    %22 = arith.addf %20, %21 : vector<1x128xf32>
    %23 = math.rsqrt %22 : vector<1x128xf32>
    %24 = vector.broadcast %23 : vector<1x128xf32> to vector<32x128xf32>
    %25 = arith.mulf %15, %24 : vector<32x128xf32>
    %c0_12 = arith.constant 0 : index
    %c0_13 = arith.constant 0 : index
    %26 = vector.load %arg3[%c0_12, %c0_13] : memref<32x1xf32, #tpu.memory_space<vmem>>, vector<32x1xf32>
    %27 = vector.broadcast %26 : vector<32x1xf32> to vector<32x128xf32>
    %28 = arith.mulf %25, %27 : vector<32x128xf32>
    %c0_14 = arith.constant 0 : index
    %c0_15 = arith.constant 0 : index
    %29 = vector.load %arg4[%c0_14, %c0_15] : memref<32x1xf32, #tpu.memory_space<vmem>>, vector<32x1xf32>
    %30 = vector.broadcast %29 : vector<32x1xf32> to vector<32x128xf32>
    %31 = arith.addf %28, %30 : vector<32x128xf32>
    %32 = tpu.iota {dimensions = array<i32: 1>} : vector<1x128xi32>
    %c0_16 = arith.constant 0 : index
    %c0_17 = arith.constant 0 : index
    %33 = vector.load %arg5[%c0_16, %c0_17] : memref<32x3xf32, #tpu.memory_space<vmem>>, vector<32x3xf32>
    %c4_i32 = arith.constant 4 : i32
    %34 = tpu.dynamic_rotate %31 by %c4_i32 dim 1 : vector<32x128xf32>, i32 -> vector<32x128xf32>
    %35 = vector.extract_strided_slice %33 {offsets = [0, 0], sizes = [32, 1], strides = [1, 1]} : vector<32x3xf32> to vector<32x1xf32>
    %36 = vector.broadcast %35 : vector<32x1xf32> to vector<32x128xf32>
    %37 = arith.mulf %36, %34 : vector<32x128xf32>
    %c4_i32_18 = arith.constant 4 : i32
    %38 = vector.broadcast %c4_i32_18 : i32 to vector<1x128xi32>
    %39 = arith.cmpi sge, %32, %38 : vector<1x128xi32>
    %cst_19 = arith.constant 0.000000e+00 : f32
    %40 = vector.shape_cast %39 : vector<1x128xi1> to vector<1x128xi1>
    %41 = vector.broadcast %40 : vector<1x128xi1> to vector<32x128xi1>
    %42 = vector.broadcast %cst_19 : f32 to vector<32x128xf32>
    %43 = arith.select %41, %37, %42 : vector<32x128xi1>, vector<32x128xf32>
    %c2_i32 = arith.constant 2 : i32
    %44 = tpu.dynamic_rotate %31 by %c2_i32 dim 1 : vector<32x128xf32>, i32 -> vector<32x128xf32>
    %45 = vector.extract_strided_slice %33 {offsets = [0, 1], sizes = [32, 1], strides = [1, 1]} : vector<32x3xf32> to vector<32x1xf32>
    %46 = vector.broadcast %45 : vector<32x1xf32> to vector<32x128xf32>
    %47 = arith.mulf %46, %44 : vector<32x128xf32>
    %48 = arith.addf %37, %47 : vector<32x128xf32>
    %c2_i32_20 = arith.constant 2 : i32
    %49 = vector.broadcast %c2_i32_20 : i32 to vector<1x128xi32>
    %50 = arith.cmpi sge, %32, %49 : vector<1x128xi32>
    %cst_21 = arith.constant 0.000000e+00 : f32
    %51 = vector.shape_cast %50 : vector<1x128xi1> to vector<1x128xi1>
    %52 = vector.broadcast %51 : vector<1x128xi1> to vector<32x128xi1>
    %53 = vector.broadcast %cst_21 : f32 to vector<32x128xf32>
    %54 = arith.select %52, %47, %53 : vector<32x128xi1>, vector<32x128xf32>
    %55 = arith.addf %43, %54 : vector<32x128xf32>
    %56 = vector.extract_strided_slice %33 {offsets = [0, 2], sizes = [32, 1], strides = [1, 1]} : vector<32x3xf32> to vector<32x1xf32>
    %57 = vector.broadcast %56 : vector<32x1xf32> to vector<32x128xf32>
    %58 = arith.mulf %57, %31 : vector<32x128xf32>
    %59 = arith.addf %48, %58 : vector<32x128xf32>
    %60 = arith.addf %55, %58 : vector<32x128xf32>
    %c0_22 = arith.constant 0 : index
    %c0_23 = arith.constant 0 : index
    %61 = memref.load %arg9[%c0_22, %c0_23] : memref<1x1xf32, #tpu.memory_space<smem>>
    %62 = arith.subf %59, %60 : vector<32x128xf32>
    %cst_24 = arith.constant 0.000000e+00 : f32
    %63 = vector.broadcast %cst_24 : f32 to vector<32x128xf32>
    %64 = arith.cmpf ogt, %62, %63 : vector<32x128xf32>
    %65 = vector.broadcast %61 : f32 to vector<32x128xf32>
    %66 = arith.mulf %65, %62 : vector<32x128xf32>
    %67 = arith.select %64, %62, %66 : vector<32x128xi1>, vector<32x128xf32>
    %68 = vector.shape_cast %67 : vector<32x128xf32> to vector<1x32x128xf32>
    %cst_25 = arith.constant dense<0.000000e+00> : vector<1xf32>
    %69 = vector.multi_reduction <add>, %68, %cst_25 [1, 2] : vector<1x32x128xf32> to vector<1xf32>
    %70 = vector.shape_cast %69 : vector<1xf32> to vector<1x1x1xf32>
    %71 = vector.extract %70[0, 0, 0] : f32 from vector<1x1x1xf32>
    %72 = vector.broadcast %71 : f32 to vector<1x1xf32>
    %73 = arith.mulf %67, %67 : vector<32x128xf32>
    %74 = vector.shape_cast %73 : vector<32x128xf32> to vector<1x32x128xf32>
    %cst_26 = arith.constant dense<0.000000e+00> : vector<1xf32>
    %75 = vector.multi_reduction <add>, %74, %cst_26 [1, 2] : vector<1x32x128xf32> to vector<1xf32>
    %76 = vector.shape_cast %75 : vector<1xf32> to vector<1x1x1xf32>
    %77 = vector.extract %76[0, 0, 0] : f32 from vector<1x1x1xf32>
    %78 = vector.broadcast %77 : f32 to vector<1x1xf32>
    %cst_27 = arith.constant 0.000000e+00 : f32
    %79 = vector.broadcast %cst_27 : f32 to vector<32x128xf32>
    %80 = arith.cmpf ogt, %60, %79 : vector<32x128xf32>
    %81 = vector.broadcast %61 : f32 to vector<32x128xf32>
    %82 = arith.mulf %81, %60 : vector<32x128xf32>
    %83 = arith.select %80, %60, %82 : vector<32x128xi1>, vector<32x128xf32>
    %84 = vector.shape_cast %83 : vector<32x128xf32> to vector<1x32x128xf32>
    %cst_28 = arith.constant dense<0.000000e+00> : vector<1xf32>
    %85 = vector.multi_reduction <add>, %84, %cst_28 [1, 2] : vector<1x32x128xf32> to vector<1xf32>
    %86 = vector.shape_cast %85 : vector<1xf32> to vector<1x1x1xf32>
    %87 = vector.extract %86[0, 0, 0] : f32 from vector<1x1x1xf32>
    %88 = vector.broadcast %87 : f32 to vector<1x1xf32>
    %89 = arith.addf %88, %72 : vector<1x1xf32>
    %cst_29 = arith.constant 2.36742431E-4 : f32
    %90 = vector.broadcast %cst_29 : f32 to vector<1x1xf32>
    %91 = arith.mulf %89, %90 : vector<1x1xf32>
    %92 = vector.broadcast %91 : vector<1x1xf32> to vector<32x128xf32>
    %93 = arith.subf %83, %92 : vector<32x128xf32>
    %94 = arith.mulf %93, %93 : vector<32x128xf32>
    %95 = vector.shape_cast %94 : vector<32x128xf32> to vector<1x32x128xf32>
    %cst_30 = arith.constant dense<0.000000e+00> : vector<1xf32>
    %96 = vector.multi_reduction <add>, %95, %cst_30 [1, 2] : vector<1x32x128xf32> to vector<1xf32>
    %97 = vector.shape_cast %96 : vector<1xf32> to vector<1x1x1xf32>
    %98 = vector.extract %97[0, 0, 0] : f32 from vector<1x1x1xf32>
    %99 = vector.broadcast %98 : f32 to vector<1x1xf32>
    %100 = arith.addf %99, %78 : vector<1x1xf32>
    %cst_31 = arith.constant 2.000000e+00 : f32
    %101 = vector.broadcast %cst_31 : f32 to vector<1x1xf32>
    %102 = arith.mulf %101, %91 : vector<1x1xf32>
    %103 = arith.mulf %102, %72 : vector<1x1xf32>
    %104 = arith.subf %100, %103 : vector<1x1xf32>
    %cst_32 = arith.constant 1.280000e+02 : f32
    %105 = vector.broadcast %cst_32 : f32 to vector<1x1xf32>
    %106 = arith.mulf %105, %91 : vector<1x1xf32>
    %107 = arith.mulf %106, %91 : vector<1x1xf32>
    %108 = arith.addf %104, %107 : vector<1x1xf32>
    %cst_33 = arith.constant 2.36742431E-4 : f32
    %109 = vector.broadcast %cst_33 : f32 to vector<1x1xf32>
    %110 = arith.mulf %108, %109 : vector<1x1xf32>
    %cst_34 = arith.constant 9.99999993E-9 : f32
    %111 = vector.broadcast %cst_34 : f32 to vector<1x1xf32>
    %112 = arith.addf %110, %111 : vector<1x1xf32>
    %113 = math.rsqrt %112 : vector<1x1xf32>
    %114 = vector.broadcast %113 : vector<1x1xf32> to vector<32x128xf32>
    %115 = arith.mulf %93, %114 : vector<32x128xf32>
    %c0_35 = arith.constant 0 : index
    %c0_36 = arith.constant 0 : index
    %116 = vector.load %arg6[%c0_35, %c0_36] : memref<16x32xf32, #tpu.memory_space<vmem>>, vector<16x32xf32>
    %cst_37 = arith.constant dense<0.000000e+00> : vector<16x128xf32>
    %117 = tpu.matmul %116, %115, %cst_37 {dimension_numbers = #tpu.dot_dimension_numbers<[1], [0], [0], [1], [0, 0, 1, 1], [], []>} : vector<16x32xf32>, vector<32x128xf32>, vector<16x128xf32> -> vector<16x128xf32>
    %c0_38 = arith.constant 0 : index
    %c0_39 = arith.constant 0 : index
    %118 = vector.load %arg7[%c0_38, %c0_39] : memref<16x1xf32, #tpu.memory_space<vmem>>, vector<16x1xf32>
    %119 = vector.broadcast %118 : vector<16x1xf32> to vector<16x128xf32>
    %120 = arith.addf %117, %119 : vector<16x128xf32>
    %121 = arith.addf %120, %1 : vector<16x128xf32>
    %c0_40 = arith.constant 0 : index
    %c0_41 = arith.constant 0 : index
    %c0_42 = arith.constant 0 : index
    %122 = vector.load %arg10[%c0_40, %c0_41, %c0_42] : memref<1x16x128xf32, #tpu.memory_space<vmem>>, vector<1x16x128xf32>
    %123 = vector.shape_cast %122 : vector<1x16x128xf32> to vector<16x128xf32>
    %124 = vector.shape_cast %121 : vector<16x128xf32> to vector<1x16x128xf32>
    tpu.vector_store %arg10[%c0_40, %c0_41, %c0_42], %124 {strides = array<i32>} : memref<1x16x128xf32, #tpu.memory_space<vmem>>, vector<1x16x128xf32>,
    return
  }
  func.func @transform_0(%arg0: i32) -> (i32, i32, i32) {
    %c0_i32 = arith.constant 0 : i32
    %c0_i32_0 = arith.constant 0 : i32
    %c0_i32_1 = arith.constant 0 : i32
    return %arg0, %c0_i32, %c0_i32_0 : i32, i32, i32
  }
  func.func @transform_1(%arg0: i32) -> (i32, i32) {
    %c0_i32 = arith.constant 0 : i32
    %c0_i32_0 = arith.constant 0 : i32
    %c0_i32_1 = arith.constant 0 : i32
    return %c0_i32, %c0_i32_0 : i32, i32
  }
  func.func @transform_2(%arg0: i32) -> (i32, i32) {
    %c0_i32 = arith.constant 0 : i32
    %c0_i32_0 = arith.constant 0 : i32
    %c0_i32_1 = arith.constant 0 : i32
    return %c0_i32, %c0_i32_0 : i32, i32
  }
  func.func @transform_3(%arg0: i32) -> (i32, i32) {
    %c0_i32 = arith.constant 0 : i32
    %c0_i32_0 = arith.constant 0 : i32
    %c0_i32_1 = arith.constant 0 : i32
    return %c0_i32, %c0_i32_0 : i32, i32
  }
  func.func @transform_4(%arg0: i32) -> (i32, i32) {
    %c0_i32 = arith.constant 0 : i32
    %c0_i32_0 = arith.constant 0 : i32
    %c0_i32_1 = arith.constant 0 : i32
    return %c0_i32, %c0_i32_0 : i32, i32
  }
  func.func @transform_5(%arg0: i32) -> (i32, i32) {
    %c0_i32 = arith.constant 0 : i32
    %c0_i32_0 = arith.constant 0 : i32
    %c0_i32_1 = arith.constant 0 : i32
    return %c0_i32, %c0_i32_0 : i32, i32
  }
  func.func @transform_6(%arg0: i32) -> (i32, i32) {
    %c0_i32 = arith.constant 0 : i32
    %c0_i32_0 = arith.constant 0 : i32
    %c0_i32_1 = arith.constant 0 : i32
    return %c0_i32, %c0_i32_0 : i32, i32
  }
  func.func @transform_7(%arg0: i32) -> (i32, i32) {
    %c0_i32 = arith.constant 0 : i32
    %c0_i32_0 = arith.constant 0 : i32
    %c0_i32_1 = arith.constant 0 : i32
    return %c0_i32, %c0_i32_0 : i32, i32
  }
  func.func @transform_8(%arg0: i32) -> (i32, i32) {
    %c0_i32 = arith.constant 0 : i32
    %c0_i32_0 = arith.constant 0 : i32
    %c0_i32_1 = arith.constant 0 : i32
    return %c0_i32, %c0_i32_0 : i32, i32
  }
  func.func @transform_9(%arg0: i32) -> (i32, i32, i32) {
    %c0_i32 = arith.constant 0 : i32
    %c0_i32_0 = arith.constant 0 : i32
    %c0_i32_1 = arith.constant 0 : i32
    return %arg0, %c0_i32, %c0_i32_0 : i32, i32, i32
  }
}

</mosaic_0001>

<bundles_post_ra>
// kernel: tpu_custom_call.1
= control target key start
LH: loop header
LB: loop body
LE: loop exit
PB: predicated region body
PF: predicated region fallthrough
CT: control target
= control target key end

     0   :  { %s1396_s0 = inlined_call_operand.vmem [shape: f32[2,16,128], index: 0, kind: input, shape index: {}]   ;;  %s1397_s1 = inlined_call_operand.vmem [shape: f32[32,16], index: 1, kind: input, shape index: {}]   ;;  %s1398_s2 = inlined_call_operand.vmem [shape: f32[32,1], index: 2, kind: input, shape index: {}]   ;;  %s1399_s3 = inlined_call_operand.vmem [shape: f32[32,1], index: 3, kind: input, shape index: {}]   ;;  %s1400_s4 = inlined_call_operand.vmem [shape: f32[32,3], index: 4, kind: input, shape index: {}]   ;;  %s1401_s5 = inlined_call_operand.vmem [shape: f32[16,32], index: 5, kind: input, shape index: {}]   ;;  %s1402_s6 = inlined_call_operand.vmem [shape: f32[16,1], index: 6, kind: input, shape index: {}]   ;;  %s1403_s7 = inlined_call_operand.<no memory space> [shape: f32[1,1], index: 7, kind: input, shape index: {}]   ;;  %s1404_s8 = inlined_call_operand.<no memory space> [shape: f32[1,1], index: 8, kind: input, shape index: {}]   ;;  %s1405_s9 = inlined_call_operand.hbm [shape: f32[2,16,128], index: 9, kind: output, shape index: {}]  }
   0x1   :  { %14 = sst [smem:[#allocation2]] %s1403_s7 }
   0x2   :  { %15 = sst [smem:[#allocation3]] %s1404_s8 }
   0x3   :  { %16 = vsyncpa [#allocation5], 0 }
   0x4   :  { %18 = vsyncpa [#allocation5 + $0x1], 0  ;;  %s1207_s13 = smov 0   ;;  %s1209_s14 = smov 0  }
   0x5   :  { %s1211_s15 = smov 0   ;;  %s1213_s16 = smov 0  }
   0x6 LB: > { %s1228_s7 = sadd.s32 4294967295, %s1141_s16   ;;  %s944_s8 = sadd.s32 4294967294, %s1141_s16   ;;  %s1141_s16 = sphi %s1213_s16, %s1411_s16   ;;  %s1137_s15 = sphi %s1211_s15, %s1410_s15   ;;  %s1133_s14 = sphi %s1209_s14, %s1409_s14   ;;  %s1129_s13 = sphi %s1207_s13, %s1408_s13  }
   0x7   : > { %s1232_s17 = sadd.s32 1, %s1141_s16   ;;  %s225_s18 = sadd.s32 1, %s1137_s15 }
   0x8   : > { %s222_s19 = ssub.s32 %s1141_s16, %s1232_s17  ;;  %p235_p0 = scmp.ne.s32.totalorder %s1137_s15, %s1133_s14 }
   0x9   : > { %p223_p1 = scmp.eq.s32.totalorder %s222_s19, 0  ;;  %p236_p2 = scmp.eq.s32.totalorder %s1228_s7, 1 }
   0xa   : > { %p241_p3 = scmp.ne.s32.totalorder %s1133_s14, %s1129_s13  ;;  %p242_p4 = scmp.eq.s32.totalorder %s944_s8, 1 }
   0xb   : > { %s1243_s20 = scalar_select %p223_p1, %s1137_s15, %s225_s18  }
   0xc   : > { %p1245_p5 = por %p236_p2, %p235_p0  ;;  %p1249_p6 = por %p242_p4, %p241_p3 }
   0xd   : > { %p947_p7 = scmp.ge.s32.totalorder %s1141_s16, 1  ;;  %p292_p8 = scmp.lt.s32.totalorder %s1141_s16, 3 }
   0xf   : > { %p293_p9 = pnand %p947_p7, %p292_p8 }
  0x10   : > { %p328_p10 = scmp.lt.s32.totalorder (!%p293_p9), %s1228_s7, 1  ;;  %v335_v0 = vld [vmem:[%s1397_s1] sm:$0xff] (!%p293_p9)  ;;  %vm339_vm0 = vcmask (!%p293_p9), 130048   ;;  %v1143_v1 = vmov (!%p293_p9), 0   ;;  %v488_v2 = vld [vmem:[%s1398_s2 + $0x10] sm:$0xff] (!%p293_p9)  ;;  %v487_v5 = vld [vmem:[%s1398_s2 + $0x8] sm:$0xff] (!%p293_p9) }
  0x11   : > { %296 = sbr.rel (%p293_p9) target bundleno = 1150 (0x47e), region = 56  ;;  %980 = vmatprep.mubr.msk.f32.mxu0 (!%p293_p9), %vm339_vm0, %v335_v0  ;;  %1064 = vset.pattern.permute.xlu1 (!%p293_p9), %v1143_v1  ;;  %v514_v3 = vld [vmem:[%s1399_s3] sm:$0xff] (!%p293_p9)  ;;  %v489_v9 = vld [vmem:[%s1398_s2 + $0x18] sm:$0xff] (!%p293_p9)  ;;  %v515_v10 = vld [vmem:[%s1399_s3 + $0x8] sm:$0xff] (!%p293_p9)  ;;  %v1144_v18 = vmov (!%p293_p9), 1   ;;  %v1145_v20 = vmov (!%p293_p9), 2  }
  0x12   : > { %502 = vperm.xlu1 (!%p293_p9), %1064, %v488_v2   ;;  %1063 = vset.pattern.permute.xlu0 (!%p293_p9), %v1143_v1  ;;  %v486_v4 = vld [vmem:[%s1398_s2] sm:$0xff] (!%p293_p9)  ;;  %v336_v11 = vld [vmem:[%s1397_s1 + $0x8] sm:$0xff] (!%p293_p9)  ;;  %v337_v12 = vld [vmem:[%s1397_s1 + $0x10] sm:$0xff] (!%p293_p9)  ;;  %s1146_s12 = smov (!%p293_p9), 4   ;;  %s1147_s8 = smov (!%p293_p9), 2   ;;  %vm782_vm15 = vcmask (!%p293_p9), 261120  }
  0x13   : > { %492 = vperm.xlu0 (!%p293_p9), %1063, %v486_v4   ;;  %v517_v13 = vld [vmem:[%s1399_s3 + $0x18] sm:$0xff] (!%p293_p9)  ;;  %v516_v14 = vld [vmem:[%s1399_s3 + $0x10] sm:$0xff] (!%p293_p9)  ;;  %v545_v16 = vld [vmem:[%s1400_s4 + $0x8] sm:$0xff] (!%p293_p9)  ;;  %s1148_s29 = smov (!%p293_p9), [#allocation4]  }
  0x14   : > { %v338_v15 = vld [vmem:[%s1397_s1 + $0x18] sm:$0xff] (!%p293_p9)  ;;  %v544_v17 = vld [vmem:[%s1400_s4] sm:$0xff] (!%p293_p9)  ;;  %v546_v19 = vld [vmem:[%s1400_s4 + $0x10] sm:$0xff] (!%p293_p9)  ;;  %s1083_s30 = sshll.u32 (!%p293_p9), %s1148_s29, 4  ;;  %s1084_s30 = int_to_ptr.vmem [resolvable:$false] %s1083_s30 }
  0x15   : > { %v547_v21 = vld [vmem:[%s1400_s4 + $0x18] sm:$0xff] (!%p293_p9) }
  0x16   : > { %520 = vperm.xlu1 (!%p293_p9), %1064, %v514_v3  }
  0x17   : > { %497 = vperm.xlu0 (!%p293_p9), %1063, %v487_v5  }
  0x18   : > { %s329_s27 = scalar_select %p328_p10, %s1228_s7, 1 }
  0x1a   : > { %s962_s11 = sshll.u32 %s329_s27, 4  ;;  %507 = vperm.xlu1 %1064, %v489_v9  }
  0x1b   : > { %s332_s18 = scalar_lea.vmem %s1396_s0, %s962_s11  ;;  %525 = vperm.xlu0 %1063, %v515_v10   ;;  %s437_s11 = sld [smem:[#allocation2]] }
  0x1c   : > { %v1276_v6 = vld [vmem:[%s332_s18] sm:$0xff]  ;;  %v1278_v7 = vld [vmem:[%s332_s18 + $0x8] sm:$0xff]  ;;  %s658_s18 = sld [smem:[#allocation3]] }
  0x1d   : > { %v997_v8 = vpack.c.bf16 %v1278_v7, %v1276_v6 }
  0x1e   : > { %535 = vperm.xlu1 %1064, %v517_v13  }
  0x1f   : > { %998 = vmatprep.subr.bf16.mxu0 %v997_v8  ;;  %530 = vperm.xlu0 %1063, %v516_v14  }
  0x20   : > { %1000 = vmatpush3.bf16.msra.mxu0 %v997_v8 }
  0x21   : > { %v442_v22 = vstv %s437_s11 }
  0x22   : > { %563 = vperm.xlu1 %1064, %v545_v16  }
  0x23   : > { %981 = vmatmul.mubr.msk.f32.vlgmr.msra.gmra.mrb[0].mxu0 %vm339_vm0, %v336_v11  ;;  %1065 = vset.pattern.permute.xlu0 %v1144_v18 }
  0x24   : > { %983 = vmatprep.mubr.msk.f32.mxu0 %vm339_vm0, %v337_v12  ;;  %596 = vperm.xlu0 %1065, %v544_v17  }
  0x26   : > { %1066 = vset.pattern.permute.xlu1 %v1144_v18 }
  0x27   : > { %984 = vmatmul.mubr.msk.f32.gmra.mrb[2].mxu0 %vm339_vm0, %v338_v15  ;;  %600 = vperm.xlu1 %1066, %v545_v16  }
  0x28   : > { %604 = vperm.xlu0 %1065, %v546_v19  }
  0x2b   : > { %1067 = vset.pattern.permute.xlu1 %v1143_v1 }
  0x2c   : > { %568 = vperm.xlu1 %1067, %v546_v19   ;;  %1069 = vset.pattern.permute.xlu0 %v1145_v20 }
  0x2d   : > { %635 = vperm.xlu0 %1069, %v545_v16  }
  0x30   : > { %1068 = vset.pattern.permute.xlu1 %v1145_v20 }
  0x31   : > { %631 = vperm.xlu1 %1068, %v544_v17   ;;  %639 = vperm.xlu0 %1069, %v546_v19  }
  0x35   : > { %1070 = vset.pattern.permute.xlu1 %v1143_v1  ;;  %1072 = vset.pattern.permute.xlu0 %v1143_v1 }
  0x36   : > { %573 = vperm.xlu1 %1070, %v547_v21   ;;  %558 = vperm.xlu0 %1072, %v544_v17  }
  0x3a   : > { %1071 = vset.pattern.permute.xlu1 %v1144_v18 }
  0x3b   : > { %608 = vperm.xlu1 %1071, %v547_v21  }
  0x3f   : > { %1073 = vset.pattern.permute.xlu1 %v1145_v20 }
  0x40   : > { %643 = vperm.xlu1 %1073, %v547_v21  }
  0x44   : > { %1074 = vset.pattern.permute.xlu1 %v1143_v1 }
  0x91   : > { %v503_v1 = vpop.permute.xlu1 %502 }
  0x92   : > { %v493_v0 = vpop.permute.xlu0 %492 }
  0x95   : > { %v521_v12 = vpop.permute.xlu1 %520 }
  0x96   : > { %v498_v2 = vpop.permute.xlu0 %497 }
  0x99   : > { %v508_v17 = vpop.permute.xlu1 %507 }
  0x9a   : > { %v526_v13 = vpop.permute.xlu0 %525 }
  0x9d   : > { %v536_v21 = vpop.permute.xlu1 %535 }
  0x9e   : > { %v531_v18 = vpop.permute.xlu0 %530 }
  0xf6   : > { %v982_v23 = vpop.f32.mrb[0].mxu0 }
  0xf7   : > { %vm439_vm1 = vcmp.gt.f32.partialorder %v982_v23, 0.0  ;;  %v444_v24 = vmul.f32 %v982_v23, %v442_v22  ;;  %v418_v25 = vpop.f32.mrb[1].mxu0 }
  0xf8   : > { %vm438_vm2 = vcmp.gt.f32.partialorder %v418_v25, 0.0  ;;  %v443_v26 = vmul.f32 %v442_v22, %v418_v25 }
  0xf9   : > { %v448_v27 = vsel %vm439_vm1, %v982_v23, %v444_v24  ;;  %v564_v23 = vpop.permute.xlu1 %563 }
  0xfa   : > { %v447_v28 = vsel %vm438_vm2, %v418_v25, %v443_v26  ;;  %v985_v29 = vpop.f32.mrb[2].mxu0  ;;  %v597_v25 = vpop.permute.xlu0 %596 }
  0xfb   : > { %v451_v30 = vadd.f32 %v448_v27, %v447_v28  ;;  %v428_v31 = vpop.f32.mrb[3].mxu0  ;;  %v446_v32 = vmul.f32 %v985_v29, %v442_v22  ;;  %vm441_vm4 = vcmp.gt.f32.partialorder %v985_v29, 0.0 }
  0xfc   : > { %vm440_vm3 = vcmp.gt.f32.partialorder %v428_v31, 0.0  ;;  %v445_v33 = vmul.f32 %v442_v22, %v428_v31 }
  0xfd   : > { %v450_v36 = vsel %vm441_vm4, %v985_v29, %v446_v32  ;;  %v601_v24 = vpop.permute.xlu1 %600 }
  0xfe   : > { %v449_v34 = vsel %vm440_vm3, %v428_v31, %v445_v33 }
  0xff   : > { %v452_v35 = vadd.f32 %v451_v30, %v449_v34 }
 0x101   : > { %v453_v37 = vadd.f32 %v452_v35, %v450_v36  ;;  %v569_v26 = vpop.permute.xlu1 %568 }
 0x103   : > { %v454_v38 = vrot.slane %v453_v37, 4 }
 0x105   : > { %v455_v39 = vadd.f32 %v454_v38, %v453_v37 }
 0x107   : > { %v456_v40 = vrot.slane %v455_v39, 2 }
 0x109   : > { %v457_v41 = vadd.f32 %v456_v40, %v455_v39 }
 0x10b   : > { %v458_v42 = vrot.slane %v457_v41, 1 }
 0x10d   : > { %v459_v43 = vadd.f32 %v458_v42, %v457_v41 }
 0x10f   : > { %v461_v44 = vmul.f32 0.03125, %v459_v43 }
 0x111   : > { %v462_v45 = vsub.f32 %v447_v28, %v461_v44  ;;  %v463_v46 = vsub.f32 %v448_v27, %v461_v44  ;;  %v464_v47 = vsub.f32 %v449_v34, %v461_v44  ;;  %v465_v48 = vsub.f32 %v450_v36, %v461_v44  ;;  %v605_v27 = vpop.permute.xlu0 %604  ;;  %v632_v28 = vpop.permute.xlu1 %631 }
 0x112   : > { %v542_v34 = vlaneseq }
 0x113   : > { %v466_v49 = vmul.f32 %v462_v45, %v462_v45  ;;  %v467_v50 = vmul.f32 %v463_v46, %v463_v46  ;;  %v468_v51 = vmul.f32 %v464_v47, %v464_v47  ;;  %v469_v53 = vmul.f32 %v465_v48, %v465_v48 }
 0x114   : > { %v543_v36 = vand.u32 127, %v542_v34 }
 0x115   : > { %v470_v52 = vadd.f32 %v467_v50, %v466_v49  ;;  %v636_v29 = vpop.permute.xlu0 %635  ;;  %v574_v30 = vpop.permute.xlu1 %573 }
 0x116   : > { %vm580_vm5 = vcmp.ge.s32.totalorder %v543_v36, 4  ;;  %vm619_vm6 = vcmp.ge.s32.totalorder %v543_v36, 2 }
 0x117   : > { %v471_v54 = vadd.f32 %v470_v52, %v468_v51 }
 0x119   : > { %v472_v55 = vadd.f32 %v471_v54, %v469_v53  ;;  %v640_v31 = vpop.permute.xlu0 %639  ;;  %v609_v32 = vpop.permute.xlu1 %608 }
 0x11b   : > { %v473_v56 = vrot.slane %v472_v55, 4 }
 0x11d   : > { %v474_v57 = vadd.f32 %v473_v56, %v472_v55  ;;  %v559_v33 = vpop.permute.xlu0 %558  ;;  %v644_v35 = vpop.permute.xlu1 %643 }
 0x11f   : > { %v475_v58 = vrot.slane %v474_v57, 2 }
 0x121   : > { %v476_v59 = vadd.f32 %v475_v58, %v474_v57 }
 0x123   : > { %v477_v60 = vrot.slane %v476_v59, 1 }
 0x125   : > { %v478_v61 = vadd.f32 %v477_v60, %v476_v59 }
 0x127   : > { %v479_v62 = vmul.f32 0.03125, %v478_v61 }
 0x129   : > { %v480_v63 = vadd.f32 1e-05, %v479_v62 }
 0x12b   : > { %1075 = vrsqrt.f32 %v480_v63 }
 0x135   : > { %v1076_v3 = vpop.eup %1075 }
 0x136   : > { %v484_v4 = vmul.f32 %v1076_v3, %v464_v47  ;;  %v485_v5 = vmul.f32 %v1076_v3, %v465_v48  ;;  %v482_v8 = vmul.f32 %v1076_v3, %v462_v45  ;;  %v483_v9 = vmul.f32 %v1076_v3, %v463_v46 }
 0x138   : > { %v510_v10 = vmul.f32 %v493_v0, %v482_v8  ;;  %v511_v11 = vmul.f32 %v498_v2, %v483_v9  ;;  %v512_v16 = vmul.f32 %v503_v1, %v484_v4  ;;  %v513_v19 = vmul.f32 %v508_v17, %v485_v5 }
 0x139   : > { %v667_v0 = vstv %s658_s18 }
 0x13a   : > { %v538_v14 = vadd.f32 %v521_v12, %v510_v10  ;;  %v539_v15 = vadd.f32 %v526_v13, %v511_v11  ;;  %v540_v20 = vadd.f32 %v531_v18, %v512_v16  ;;  %v541_v22 = vadd.f32 %v536_v21, %v513_v19 }
 0x13c   : > { %550 = vrot.lane.b32.xlu0 %v539_v15, %s1146_s12  ;;  %548 = vrot.lane.b32.xlu1 %v538_v14, %s1146_s12  ;;  %v646_v44 = vmul.f32 %v632_v28, %v538_v14  ;;  %v647_v46 = vmul.f32 %v636_v29, %v539_v15  ;;  %v648_v1 = vmul.f32 %v640_v31, %v540_v20 }
 0x13d   : > { %v649_v8 = vmul.f32 %v644_v35, %v541_v22 }
 0x140   : > { %589 = vrot.lane.b32.xlu0 %v539_v15, %s1147_s8  ;;  %587 = vrot.lane.b32.xlu1 %v538_v14, %s1147_s8 }
 0x144   : > { %552 = vrot.lane.b32.xlu0 %v540_v20, %s1146_s12  ;;  %591 = vrot.lane.b32.xlu1 %v540_v20, %s1147_s8 }
 0x148   : > { %554 = vrot.lane.b32.xlu0 %v541_v22, %s1146_s12  ;;  %593 = vrot.lane.b32.xlu1 %v541_v22, %s1147_s8  ;;  %s325_s8 = sand.u32 1, %s1133_s14  }
 0x149   : > { %s948_s18 = sshll.u32 %s325_s8, 4 }
 0x1ae   : > { %v551_v37 = vpop.permute.xlu0 %550  ;;  %v549_v38 = vpop.permute.xlu1 %548 }
 0x1af   : > { %v577_v39 = vmul.f32 %v564_v23, %v551_v37  ;;  %v576_v40 = vmul.f32 %v559_v33, %v549_v38 }
 0x1b1   : > { %v584_v47 = vsel %vm580_vm5, %v577_v39, 0.0  ;;  %v583_v50 = vsel %vm580_vm5, %v576_v40, 0.0 }
 0x1b2   : > { %v590_v41 = vpop.permute.xlu0 %589  ;;  %v588_v43 = vpop.permute.xlu1 %587 }
 0x1b3   : > { %v612_v42 = vmul.f32 %v601_v24, %v590_v41  ;;  %v611_v45 = vmul.f32 %v597_v25, %v588_v43 }
 0x1b5   : > { %v616_v48 = vadd.f32 %v612_v42, %v577_v39  ;;  %v623_v49 = vsel %vm619_vm6, %v612_v42, 0.0  ;;  %v615_v52 = vadd.f32 %v611_v45, %v576_v40  ;;  %v622_v53 = vsel %vm619_vm6, %v611_v45, 0.0 }
 0x1b6   : > { %v627_v51 = vadd.f32 %v623_v49, %v584_v47  ;;  %v553_v54 = vpop.permute.xlu0 %552  ;;  %v626_v56 = vadd.f32 %v622_v53, %v583_v50  ;;  %v592_v58 = vpop.permute.xlu1 %591 }
 0x1b7   : > { %v651_v55 = vadd.f32 %v647_v46, %v616_v48  ;;  %v578_v57 = vmul.f32 %v569_v26, %v553_v54  ;;  %v650_v60 = vadd.f32 %v646_v44, %v615_v52  ;;  %v613_v61 = vmul.f32 %v605_v27, %v592_v58 }
 0x1b8   : > { %v655_v59 = vadd.f32 %v647_v46, %v627_v51  ;;  %v654_v62 = vadd.f32 %v646_v44, %v626_v56 }
 0x1b9   : > { %v585_v63 = vsel %vm580_vm5, %v578_v57, 0.0  ;;  %v617_v3 = vadd.f32 %v613_v61, %v578_v57  ;;  %v624_v4 = vsel %vm619_vm6, %v613_v61, 0.0 }
 0x1ba   : > { %v660_v2 = vsub.f32 %v651_v55, %v655_v59  ;;  %v555_v5 = vpop.permute.xlu0 %554  ;;  %v659_v9 = vsub.f32 %v650_v60, %v654_v62  ;;  %v628_v10 = vadd.f32 %v624_v4, %v585_v63  ;;  %v594_v12 = vpop.permute.xlu1 %593  ;;  %vm706_vm9 = vcmp.gt.f32.partialorder %v654_v62, 0.0 }
 0x1bb   : > { %v579_v11 = vmul.f32 %v574_v30, %v555_v5  ;;  %v652_v13 = vadd.f32 %v648_v1, %v617_v3  ;;  %v614_v14 = vmul.f32 %v609_v32, %v594_v12  ;;  %v710_v29 = vmul.f32 %v667_v0, %v654_v62 }
 0x1bc   : > { %vm664_vm7 = vcmp.gt.f32.partialorder %v660_v2, 0.0  ;;  %v669_v15 = vmul.f32 %v667_v0, %v660_v2  ;;  %v656_v16 = vadd.f32 %v648_v1, %v628_v10  ;;  %vm663_vm8 = vcmp.gt.f32.partialorder %v659_v9, 0.0 }
 0x1bd   : > { %v586_v17 = vsel %vm580_vm5, %v579_v11, 0.0  ;;  %v668_v18 = vmul.f32 %v667_v0, %v659_v9  ;;  %v618_v19 = vadd.f32 %v614_v14, %v579_v11  ;;  %v625_v20 = vsel %vm619_vm6, %v614_v14, 0.0 }
 0x1be   : > { %v673_v21 = vsel %vm664_vm7, %v660_v2, %v669_v15  ;;  %v661_v23 = vsub.f32 %v652_v13, %v656_v16  ;;  %v629_v22 = vadd.f32 %v625_v20, %v586_v17  ;;  %v711_v32 = vmul.f32 %v667_v0, %v655_v59 }
 0x1bf   : > { %v672_v24 = vsel %vm663_vm8, %v659_v9, %v668_v18  ;;  %v690_v25 = vmul.f32 %v673_v21, %v673_v21  ;;  %v653_v26 = vadd.f32 %v649_v8, %v618_v19  ;;  %vm707_vm11 = vcmp.gt.f32.partialorder %v655_v59, 0.0 }
 0x1c0   : > { %v676_v27 = vadd.f32 %v673_v21, %v672_v24  ;;  %v689_v28 = vmul.f32 %v672_v24, %v672_v24  ;;  %v657_v30 = vadd.f32 %v649_v8, %v629_v22  ;;  %vm665_vm10 = vcmp.gt.f32.partialorder %v661_v23, 0.0 }
 0x1c1   : > { %v670_v31 = vmul.f32 %v667_v0, %v661_v23  ;;  %v712_v36 = vmul.f32 %v667_v0, %v656_v16  ;;  %vm708_vm12 = vcmp.gt.f32.partialorder %v656_v16, 0.0  ;;  %v714_v39 = vsel %vm706_vm9, %v654_v62, %v710_v29  ;;  %v771_v29 = vld [vmem:[%s1402_s6 + $0x8] sm:$0xff] }
 0x1c2   : > { %v693_v33 = vadd.f32 %v690_v25, %v689_v28  ;;  %v662_v34 = vsub.f32 %v653_v26, %v657_v30  ;;  %v713_v41 = vmul.f32 %v667_v0, %v657_v30  ;;  %v715_v42 = vsel %vm707_vm11, %v655_v59, %v711_v32 }
 0x1c3   : > { %v674_v35 = vsel %vm665_vm10, %v661_v23, %v670_v31  ;;  %vm709_vm14 = vcmp.gt.f32.partialorder %v657_v30, 0.0  ;;  %v716_v45 = vsel %vm708_vm12, %v656_v16, %v712_v36  ;;  %v718_v48 = vadd.f32 %v715_v42, %v714_v39  ;;  %v770_v31 = vld [vmem:[%s1402_s6] sm:$0xff] }
 0x1c4   : > { %v677_v37 = vadd.f32 %v676_v27, %v674_v35  ;;  %v691_v38 = vmul.f32 %v674_v35, %v674_v35  ;;  %vm666_vm13 = vcmp.gt.f32.partialorder %v662_v34, 0.0  ;;  %v671_v40 = vmul.f32 %v667_v0, %v662_v34 }
 0x1c5   : > { %v717_v49 = vsel %vm709_vm14, %v657_v30, %v713_v41  ;;  %v719_v51 = vadd.f32 %v718_v48, %v716_v45  ;;  %v768_v30 = vld [vmem:[%s1401_s5] sm:$0xff] }
 0x1c6   : > { %v694_v43 = vadd.f32 %v693_v33, %v691_v38  ;;  %v675_v44 = vsel %vm666_vm13, %v662_v34, %v671_v40  ;;  %994 = vmatprep.mubr.msk.f32.mxu1 %vm782_vm15, %v768_v30 }
 0x1c7   : > { %v678_v46 = vadd.f32 %v677_v37, %v675_v44  ;;  %v692_v47 = vmul.f32 %v675_v44, %v675_v44  ;;  %v720_v52 = vadd.f32 %v719_v51, %v717_v49 }
 0x1c9   : > { %679 = vadd.xlane.f32.xlu0 %v678_v46  ;;  %v695_v50 = vadd.f32 %v694_v43, %v692_v47 }
 0x1cb   : > { %696 = vadd.xlane.f32.xlu1 %v695_v50 }
 0x1cd   : > { %721 = vadd.xlane.f32.xlu0 %v720_v52 }
 0x1dc   : > { %774 = vperm.xlu1 %1074, %v770_v31  }
 0x256   : > { %v680_v53 = vpop.xlane.xlu0 %679 }
 0x257   : > { %v681_v54 = vrot.slane %v680_v53, 4 }
 0x258   : > { %v697_v55 = vpop.xlane.xlu1 %696 }
 0x259   : > { %v682_v56 = vadd.f32 %v681_v54, %v680_v53  ;;  %v698_v57 = vrot.slane %v697_v55, 4 }
 0x25a   : > { %v722_v58 = vpop.xlane.xlu0 %721 }
 0x25b   : > { %v683_v59 = vrot.slane %v682_v56, 2  ;;  %v699_v60 = vadd.f32 %v698_v57, %v697_v55  ;;  %v723_v61 = vrot.slane %v722_v58, 4  ;;  %v769_v55 = vld [vmem:[%s1401_s5 + $0x8] sm:$0xff] }
 0x25d   : > { %v700_v62 = vrot.slane %v699_v60, 2  ;;  %v724_v63 = vadd.f32 %v723_v61, %v722_v58  ;;  %v684_v0 = vadd.f32 %v683_v59, %v682_v56  ;;  %v775_v56 = vpop.permute.xlu1 %774 }
 0x25f   : > { %v725_v1 = vrot.slane %v724_v63, 2  ;;  %v685_v2 = vrot.slane %v684_v0, 1  ;;  %v701_v3 = vadd.f32 %v700_v62, %v699_v60 }
 0x261   : > { %v686_v4 = vadd.f32 %v685_v2, %v684_v0  ;;  %v702_v5 = vrot.slane %v701_v3, 1  ;;  %v726_v8 = vadd.f32 %v725_v1, %v724_v63 }
 0x263   : > { %1009 = vpush %v686_v4  ;;  %v703_v9 = vadd.f32 %v702_v5, %v701_v3  ;;  %v727_v10 = vrot.slane %v726_v8, 1 }
 0x265   : > { %1011 = vpush %v703_v9  ;;  %v728_v11 = vadd.f32 %v727_v10, %v726_v8 }
 0x267   : > { %1013 = vpush %v728_v11 }
 0x294   : > { %s1010_s19 = spop %1009 }
 0x295   : > { %v688_v12 = vstv %s1010_s19  ;;  %s327_s19 = scalar_lea.vmem [#allocation4], %s948_s18 }
 0x296   : > { %s1327_s23 = spop %1011 }
 0x297   : > { %v705_v40 = vstv %s1327_s23  ;;  %s882_s23 = sshll.u32 %s327_s19, 4  ;;  %s1347_s23 = int_to_ptr.vmem [resolvable:$true] %s882_s23 }
 0x298   : > { %s1014_s24 = spop %1013  ;;  %s1079_s28 = scalar_lea.vmem %s1347_s23, 256 }
 0x299   : > { %v730_v13 = vstv %s1014_s24  ;;  %s963_s24 = sshll.u32 %s1228_s7, 8  ;;  %s1355_s7 = scalar_lea.sflag [#allocation5], %s325_s8 }
 0x29a   : > { %v731_v14 = vadd.f32 %v730_v13, %v688_v12  ;;  %s1352_s27 = scalar_lea.hbm %s1405_s9, %s963_s24  ;;  %p1080_p11 = scmp.ne.s32.totalorder %s1347_s23, %s1079_s28 }
 0x29b   : > { %p1086_p0 = scmp.lt.s32.totalorder %s1347_s23, %s1084_s30 }
 0x29c   : > { %v732_v15 = vmul.f32 0.00023674243, %v731_v14  ;;  %p1081_p12 = pnand %p1080_p11, %p1245_p5 }
 0x29e   : > { %v733_v16 = vsub.f32 %v714_v39, %v732_v15  ;;  %v734_v17 = vsub.f32 %v715_v42, %v732_v15  ;;  %v735_v18 = vsub.f32 %v716_v45, %v732_v15  ;;  %v755_v19 = vmul.f32 2.0, %v732_v15  ;;  %p1082_p13 = pneg %p1081_p12 }
 0x29f   : > { %v736_v20 = vsub.f32 %v717_v49, %v732_v15  ;;  %v758_v39 = vmul.f32 128.0, %v732_v15 }
 0x2a0   : > { %v737_v21 = vmul.f32 %v733_v16, %v733_v16  ;;  %v738_v23 = vmul.f32 %v734_v17, %v734_v17  ;;  %v756_v22 = vmul.f32 %v755_v19, %v688_v12  ;;  %v739_v24 = vmul.f32 %v735_v18, %v735_v18 }
 0x2a1   : > { %v740_v26 = vmul.f32 %v736_v20, %v736_v20  ;;  %v759_v44 = vmul.f32 %v758_v39, %v732_v15 }
 0x2a2   : > { %v741_v25 = vadd.f32 %v738_v23, %v737_v21 }
 0x2a4   : > { %v742_v27 = vadd.f32 %v741_v25, %v739_v24 }
 0x2a6   : > { %v743_v28 = vadd.f32 %v742_v27, %v740_v26 }
 0x2a8   : > { %744 = vadd.xlane.f32.xlu0 %v743_v28 }
 0x2be   : > { %779 = vperm.xlu0 %1072, %v771_v29  }
 0x335   : > { %v745_v32 = vpop.xlane.xlu0 %744 }
 0x336   : > { %v746_v33 = vrot.slane %v745_v32, 4 }
 0x338   : > { %v747_v34 = vadd.f32 %v746_v33, %v745_v32 }
 0x33a   : > { %v748_v35 = vrot.slane %v747_v34, 2 }
 0x33c   : > { %v749_v36 = vadd.f32 %v748_v35, %v747_v34 }
 0x33d   : > { %v780_v57 = vpop.permute.xlu0 %779 }
 0x33e   : > { %v750_v37 = vrot.slane %v749_v36, 1 }
 0x340   : > { %v751_v38 = vadd.f32 %v750_v37, %v749_v36 }
 0x342   : > { %1015 = vpush %v751_v38 }
 0x373   : > { %s1016_s10 = spop %1015 }
 0x374   : > { %v753_v41 = vstv %s1016_s10  ;;  %s1085_s10 = scalar_lea.vmem %s1084_s30, 512 }
 0x375   : > { %v754_v42 = vadd.f32 %v753_v41, %v705_v40  ;;  %p1087_p1 = scmp.lt.s32.totalorder %s1085_s10, %s1079_s28 }
 0x377   : > { %v757_v43 = vsub.f32 %v754_v42, %v756_v22  ;;  %p1088_p2 = por %p1087_p1, %p1086_p0 }
 0x379   : > { %v760_v45 = vadd.f32 %v759_v44, %v757_v43  ;;  %p1089_p3 = pnand %p1088_p2, %p1082_p13 }
 0x37b   : > { %v761_v46 = vmul.f32 0.00023674243, %v760_v45 }
 0x37d   : > { %v762_v47 = vadd.f32 1e-08, %v761_v46 }
 0x37f   : > { %1077 = vrsqrt.f32 %v762_v47 }
 0x389   : > { %v1078_v48 = vpop.eup %1077 }
 0x38a   : > { %v764_v49 = vmul.f32 %v1078_v48, %v733_v16  ;;  %v765_v50 = vmul.f32 %v1078_v48, %v734_v17  ;;  %v766_v51 = vmul.f32 %v1078_v48, %v735_v18  ;;  %v767_v52 = vmul.f32 %v1078_v48, %v736_v20 }
 0x38c   : > { %v1001_v53 = vpack.c.bf16 %v765_v50, %v764_v49  ;;  %v1005_v54 = vpack.c.bf16 %v767_v52, %v766_v51 }
 0x38e   : > { %1002 = vmatprep.subr.bf16.mxu1 %v1001_v53 }
 0x38f   : > { %1004 = vmatpush3.bf16.msra.mxu1 %v1001_v53 }
 0x390   : > { %1006 = vmatprep.subr.bf16.mxu1 %v1005_v54 }
 0x393   : > { %1008 = vmatpush3.bf16.msra.mxu1 %v1005_v54 }
 0x396   : > { %995 = vmatmul.mubr.msk.f32.vlgmr.msra.gmra.mrb[0].mxu1 %vm782_vm15, %v769_v55 }
 0x469   : > { %v996_v58 = vpop.f32.mrb[0].mxu1 }
 0x46a   : > { %v861_v59 = vadd.f32 %v996_v58, %v780_v57  ;;  %v855_v60 = vpop.f32.mrb[1].mxu1 }
 0x46b   : > { %v856_v61 = vadd.f32 %v855_v60, %v775_v56 }
 0x46c   : > { %v865_v62 = vadd.f32 %v861_v59, %v1278_v7 }
 0x46d   : > { %v864_v63 = vadd.f32 %v856_v61, %v1276_v6 }
 0x46e   : > { %867 = vst [vmem:[%s327_s19 + $0x8] sm:$0xff] %v865_v62 }
 0x46f   : > { %866 = vst [vmem:[%s327_s19] sm:$0xff] %v864_v63 }
 0x470   : > { %1092 = shalt.err (!%p1089_p3)
}
 0x471   : > { %s1093_s11 = scalar_lea.hbm %s1352_s27, 256  ;;  %s1097_s18 = scalar_lea.hbm %s1405_s9, 512 }
 0x472   : > { %p1094_p4 = scmp.ne.s32.totalorder %s1352_s27, %s1093_s11  ;;  %p1098_p9 = scmp.lt.u32.totalorder %s1352_s27, %s1405_s9 }
 0x473   : > { %p1099_p10 = scmp.lt.u32.totalorder %s1097_s18, %s1093_s11  ;;  %p1101_p12 = scmp.lt.u32.totalorder %s1093_s11, %s1352_s27 }
 0x474   : > { %p1095_p7 = pnand %p1094_p4, %p1245_p5 }
 0x475   : > { %p1100_p11 = por %p1099_p10, %p1098_p9 }
 0x476   : > { %p1096_p8 = pneg %p1095_p7 }
 0x477   : > { %p1102_p13 = por %p1101_p12, %p1100_p11 }
 0x479   : > { %p1103_p0 = pnand %p1102_p13, %p1096_p8 }
 0x47b   : > { %1106 = shalt.err (!%p1103_p0)
}
 0x47c   : > { %s1149_s25 = smov 128   ;;  %s1150_s26 = smov 8  }
 0x47d   : > { %1017 = dma.vmem_to_hbm [thread:$0]  (%p1245_p5), %s1347_s23, 256, %s1352_s27, %s1355_s7, %s1149_s25, %s1149_s25, %s1150_s26  }
 0x47e PF: > { %p1023_p1 = scmp.ge.s32.totalorder %s1141_s16, 2  ;;  %s897_s28 = sand.u32 1, %s1129_s13  }
 0x47f   : > { %s898_s29 = scalar_lea.sflag [#allocation5], %s897_s28 }
 0x480   : > { %p1020_p2 = pnand %p1023_p1, %p1249_p6 }
 0x482   : > { %1124 = dma.done.wait (!%p1020_p2), %s898_s29, 256  }
 0x483   : > { %1126 = vsyncadd (!%p1020_p2), %s898_s29, 4294967040  ;;  %p21_p3 = scmp.ge.s32.totalorder %s1232_s17, 4   ;;  %s1408_s13 = smov %s1133_s14 }
 0x484   : > { %s1409_s14 = smov %s1137_s15  ;;  %s1410_s15 = smov %s1243_s20 }
 0x485   : > { %s1411_s16 = smov %s1232_s17  ;;  %23 = sbr.rel (!%p21_p3) target bundleno = 6 (0x6), region = 91 }
 0x48c   :  { %903 = vsyncpa [#allocation5], 1 }
 0x48d   :  { %905 = vsyncpa [#allocation5 + $0x1], 1 }

</bundles_post_ra>
